<compile_context>
chip_gen: v5e
topology: v5e:2x2
jax: 0.10.0
libtpu: 0.0.40
codegen_flags: <defaults>
</compile_context>

<pallas_src>
import jax
import jax.numpy as jnp
from jax.experimental import pallas as pl
from jax.experimental.pallas import tpu as pltpu

_INV_SQRT2 = 0.7071067811865476
_TARGET_TILE_ELEMS = 1 << 19  # ~512K output elems/step (2 MiB f32): >=85% roofline


def _gelu_exact_f32(a):
    # exact (erf-based) GELU in f32, matching torch.nn.GELU() default
    return 0.5 * a * (1.0 + jax.lax.erf(a * jnp.float32(_INV_SQRT2)))


def _geglu_split_kernel(a_ref, b_ref, o_ref):
    # a_ref, b_ref, o_ref: (TR, TW) — split already done by the DMA engine.
    g = _gelu_exact_f32(a_ref[...].astype(jnp.float32))
    # Multiply in the output dtype: no upcast of b, fewer live f32 vregs.
    o_ref[...] = (g.astype(o_ref.dtype) * b_ref[...]).astype(o_ref.dtype)


def _geglu_fused_kernel(x_ref, o_ref):
    # x_ref: (TR, 2W), o_ref: (TR, W) — in-register split (fallback path).
    x = x_ref[...]
    c = x.shape[-1] // 2
    g = _gelu_exact_f32(x[..., :c].astype(jnp.float32))
    o_ref[...] = (g.astype(o_ref.dtype) * x[..., c:]).astype(o_ref.dtype)


def _sublane_pack(dtype) -> int:
    """Native sublane multiple: 8 for 32-bit, 16 for bf16/fp16, 32 for 8-bit."""
    bits = jnp.dtype(dtype).itemsize * 8
    return 8 * max(1, 32 // max(bits, 8))


def _round_up(x: int, m: int) -> int:
    return ((x + m - 1) // m) * m


def _vmem_limit_bytes() -> int:
    phys = 64 * 1024 * 1024  # conservative (v7x) if query unavailable
    try:
        phys = int(pltpu.get_tpu_info().vmem_capacity_bytes)
    except Exception:
        pass
    # Half of physical, never below the 32 MiB default, never above 64 MiB:
    # our tiles need <= ~12 MiB double-buffered, leave headroom for Mosaic.
    return max(32 * 1024 * 1024, min(phys // 2, 64 * 1024 * 1024))


def _pick_row_tile(r: int, tw: int, dtype) -> int:
    sub = _sublane_pack(dtype)
    tr = max(sub, (_TARGET_TILE_ELEMS // max(tw, 1)) // sub * sub)
    return min(tr, _round_up(r, sub))


def geglu(x: jax.Array) -> jax.Array:
    """GEGLU forward: gelu(x[..., :C/2]) * x[..., C/2:].  [..., 2W] -> [..., W]."""
    *lead, c2 = x.shape
    assert c2 % 2 == 0, "last dim must be even"
    w = c2 // 2
    r = 1
    for d in lead:
        r *= d
    x2 = x.reshape(r, c2)
    vmem_limit = _vmem_limit_bytes()

    if w % 128 == 0:
        # ---- fast path: lane-dense split at the BlockSpec level ----
        # tw must divide w so the gate half lands on a block boundary; since
        # w % 128 == 0 the worst case is tw = 128 (paired with a large tr).
        tw = next(c for c in (2048, 1024, 512, 256, 128) if w % c == 0)
        tr = _pick_row_tile(r, tw, x.dtype)
        n_w = w // tw
        out2 = pl.pallas_call(
            _geglu_split_kernel,
            out_shape=jax.ShapeDtypeStruct((r, w), x.dtype),
            grid=(pl.cdiv(r, tr), n_w),  # ragged row edge handled by masking
            in_specs=[
                # GELU half: block-columns [0, n_w)
                pl.BlockSpec((tr, tw), lambda i, j: (i, j)),
                # gate half: block-columns [n_w, 2*n_w)
                pl.BlockSpec((tr, tw), lambda i, j, _o=n_w: (i, j + _o)),
            ],
            out_specs=pl.BlockSpec((tr, tw), lambda i, j: (i, j)),
            compiler_params=pltpu.CompilerParams(
                dimension_semantics=("parallel", "parallel"),
                vmem_limit_bytes=vmem_limit,
            ),
        )(x2, x2)
    else:
        # ---- fallback: full-width blocks, split in-register ----
        tr = _pick_row_tile(r, w, x.dtype)
        out2 = pl.pallas_call(
            _geglu_fused_kernel,
            out_shape=jax.ShapeDtypeStruct((r, w), x.dtype),
            grid=(pl.cdiv(r, tr),),
            in_specs=[pl.BlockSpec((tr, c2), lambda i: (i, 0))],
            out_specs=pl.BlockSpec((tr, w), lambda i: (i, 0)),
            compiler_params=pltpu.CompilerParams(
                dimension_semantics=("parallel",),
                vmem_limit_bytes=vmem_limit,
            ),
        )(x2)

    return out2.reshape(*lead, w)


def _geglu_ref(x: jax.Array) -> jax.Array:
    c = x.shape[-1] // 2
    a = x[..., :c].astype(jnp.float32)
    b = x[..., c:].astype(jnp.float32)
    return jax.nn.gelu(a, approximate=False) * b


if __name__ == "__main__":
    key = jax.random.PRNGKey(0)
    k1, k2, k3, k4 = jax.random.split(key, 4)

    def _check(x, atol, rtol, expect_shape):
        out = geglu(x)
        jax.block_until_ready(out)
        ref = _geglu_ref(x)
        assert out.shape == expect_shape, (out.shape, expect_shape)
        assert jnp.allclose(out.astype(jnp.float32), ref, atol=atol, rtol=rtol), (
            f"mismatch for shape {x.shape} dtype {x.dtype}"
        )

    # Case 1: module's shipped shape [B, H, 2W] with W=64 (fallback path).
    x1 = jax.random.normal(k1, (2, 8, 128), dtype=jnp.float32)
    _check(x1, 1e-5, 1e-5, (2, 8, 64))

    # Case 2: W=128 -> lane-dense BlockSpec-split fast path.
    x2 = jax.random.normal(k2, (2, 8, 256), dtype=jnp.float32)
    _check(x2, 1e-5, 1e-5, (2, 8, 128))

    # Case 3: awkward (odd) row count -> exercises the masked ragged row edge.
    x3 = jax.random.normal(k3, (3, 5, 512), dtype=jnp.float32)
    _check(x3, 1e-5, 1e-5, (3, 5, 256))

    # Case 4: bf16 I/O, rows not a multiple of the bf16 sublane pack (16).
    x4 = jax.random.normal(k4, (2, 7, 256), dtype=jnp.bfloat16)
    _check(x4, 2e-2, 2e-2, (2, 7, 128))

    print("KERNEL_OK")
</pallas_src>

<mosaic_0001>
module attributes {stable_mosaic.version = 11 : i64} {
  func.func @_geglu_fused_kernel(%arg0: i32, %arg1: memref<16x128xf32, #tpu.memory_space<vmem>>, %arg2: memref<16x64xf32, #tpu.memory_space<vmem>>) attributes {dimension_semantics = [#tpu.dimension_semantics<parallel>], iteration_bounds = array<i64: 1>, scalar_prefetch = 0 : i64, scratch_operands = 0 : i64, tpu.core_type = #tpu.core_type<tc>, window_params = [{transform_indices = @transform_0, window_bounds = array<i64: 16, 128>}, {transform_indices = @transform_1, window_bounds = array<i64: 16, 64>}]} {
    %c0 = arith.constant 0 : index
    %c0_0 = arith.constant 0 : index
    %0 = vector.load %arg1[%c0, %c0_0] : memref<16x128xf32, #tpu.memory_space<vmem>>, vector<16x128xf32>
    %1 = vector.extract_strided_slice %0 {offsets = [0, 0], sizes = [16, 64], strides = [1, 1]} : vector<16x128xf32> to vector<16x64xf32>
    %cst = arith.constant 5.000000e-01 : f32
    %2 = vector.broadcast %cst : f32 to vector<16x64xf32>
    %3 = arith.mulf %2, %1 : vector<16x64xf32>
    %cst_1 = arith.constant 0.707106769 : f32
    %4 = vector.broadcast %cst_1 : f32 to vector<16x64xf32>
    %5 = arith.mulf %1, %4 : vector<16x64xf32>
    %6 = math.erf %5 : vector<16x64xf32>
    %cst_2 = arith.constant 1.000000e+00 : f32
    %7 = vector.broadcast %cst_2 : f32 to vector<16x64xf32>
    %8 = arith.addf %7, %6 : vector<16x64xf32>
    %9 = arith.mulf %3, %8 : vector<16x64xf32>
    %10 = vector.extract_strided_slice %0 {offsets = [0, 64], sizes = [16, 64], strides = [1, 1]} : vector<16x128xf32> to vector<16x64xf32>
    %11 = arith.mulf %9, %10 : vector<16x64xf32>
    %c0_3 = arith.constant 0 : index
    %c0_4 = arith.constant 0 : index
    %12 = vector.load %arg2[%c0_3, %c0_4] : memref<16x64xf32, #tpu.memory_space<vmem>>, vector<16x64xf32>
    tpu.vector_store %arg2[%c0_3, %c0_4], %11 {strides = array<i32>} : memref<16x64xf32, #tpu.memory_space<vmem>>, vector<16x64xf32>,
    return
  }
  func.func @transform_0(%arg0: i32) -> (i32, i32) {
    %c0_i32 = arith.constant 0 : i32
    %c0_i32_0 = arith.constant 0 : i32
    return %arg0, %c0_i32 : i32, i32
  }
  func.func @transform_1(%arg0: i32) -> (i32, i32) {
    %c0_i32 = arith.constant 0 : i32
    %c0_i32_0 = arith.constant 0 : i32
    return %arg0, %c0_i32 : i32, i32
  }
}

</mosaic_0001>

<bundles_post_ra>
// kernel: tpu_custom_call.1
= control target key start
LH: loop header
LB: loop body
LE: loop exit
PB: predicated region body
PF: predicated region fallthrough
CT: control target
= control target key end

     0   :  { %6 = vsyncpa [#allocation3], 0  ;;  %s257_s0 = inlined_call_operand.hbm [shape: f32[16,128], index: 0, kind: input, shape index: {}]   ;;  %s258_s1 = inlined_call_operand.hbm [shape: f32[16,64], index: 1, kind: output, shape index: {}]  }
   0x1   :  { %7 = vsyncpa [#allocation4], 0  ;;  %s12_s8 = sshll.u32 %s257_s0, 4  ;;  %s210_s9 = smov [#allocation2]   ;;  %s13_s8 = int_to_ptr.hbm [resolvable:$true] %s12_s8 }
   0x2   :  { %s14_s10 = sshll.u32 %s210_s9, 4  ;;  %s211_s11 = smov 128   ;;  %s15_s10 = int_to_ptr.vmem [resolvable:$true] %s14_s10 }
   0x3   :  { %s212_s12 = smov 8  }
   0x4   :  { %20 = dma.hbm_to_vmem [thread:$0]  %s13_s8, 256, %s15_s10, [#allocation3], %s211_s11, %s211_s11, %s212_s12  }
   0x5   :  { %206 = dma.done.wait [#allocation3], 256  }
   0x6   :  { %207 = vsyncadd [#allocation3], 4294967040  ;;  %v231_v0 = vld [vmem:[#allocation2] sm:$0xff]  ;;  %s213_s13 = smov 64   ;;  %v234_v1 = vld [vmem:[#allocation2 + $0x8] sm:$0xff]  ;;  %vm125_vm8 = vcmask 523264  }
   0x7   :  { %117 = vrot.lane.b32.xlu0 %v231_v0, %s213_s13  ;;  %v238_v2 = vmul.f32 0.70710677, %v231_v0  ;;  %v243_v5 = vmul.f32 0.70710677, %v234_v1  ;;  %s214_s0 = smov [#allocation5]   ;;  %s134_s17 = sshll.u32 %s258_s1, 4  ;;  %s135_s17 = int_to_ptr.hbm [resolvable:$true] %s134_s17 }
   0x8   :  { %s132_s14 = sshll.u32 %s214_s0, 4  ;;  %s133_s14 = int_to_ptr.vmem [resolvable:$true] %s132_s14 }
   0x9   :  { %v31_v3 = vmul.f32 %v238_v2, %v238_v2  ;;  %v71_v6 = vmul.f32 %v243_v5, %v243_v5 }
   0xb   :  { %v32_v4 = vmin.f32 %v31_v3, 16.0  ;;  %v72_v9 = vmin.f32 %v71_v6, 16.0 }
   0xd   :  { %v44_v7 = vmul.f32 3.8918573e-05, %v32_v4  ;;  %v84_v13 = vmul.f32 3.8918573e-05, %v72_v9  ;;  %v33_v20 = vmul.f32 2.1237322e-06, %v32_v4 }
   0xe   :  { %v73_v27 = vmul.f32 2.1237322e-06, %v72_v9 }
   0xf   :  { %119 = vrot.lane.b32.xlu0 %v234_v1, %s213_s13  ;;  %v45_v8 = vadd.f32 0.001143296, %v44_v7  ;;  %v85_v15 = vadd.f32 0.001143296, %v84_v13  ;;  %v34_v23 = vadd.f32 0.00028619796, %v33_v20 }
  0x10   :  { %v74_v31 = vadd.f32 0.00028619796, %v73_v27  ;;  %v27_v13 = vmul.f32 0.5, %v231_v0 }
  0x11   :  { %v46_v10 = vmul.f32 %v45_v8, %v32_v4  ;;  %v86_v16 = vmul.f32 %v85_v15, %v72_v9  ;;  %v35_v26 = vmul.f32 %v34_v23, %v32_v4 }
  0x12   :  { %v75_v34 = vmul.f32 %v74_v31, %v72_v9 }
  0x13   :  { %v47_v11 = vadd.f32 0.014752088, %v46_v10  ;;  %v87_v18 = vadd.f32 0.014752088, %v86_v16  ;;  %v36_v30 = vadd.f32 0.0036580483, %v35_v26 }
  0x14   :  { %v76_v38 = vadd.f32 0.0036580483, %v75_v34 }
  0x15   :  { %v48_v12 = vmul.f32 %v47_v11, %v32_v4  ;;  %v88_v19 = vmul.f32 %v87_v18, %v72_v9  ;;  %v37_v33 = vmul.f32 %v36_v30, %v32_v4 }
  0x16   :  { %v77_v41 = vmul.f32 %v76_v38, %v72_v9 }
  0x17   :  { %v49_v14 = vadd.f32 0.112945676, %v48_v12  ;;  %v89_v22 = vadd.f32 0.112945676, %v88_v19  ;;  %v38_v37 = vadd.f32 0.05243302, %v37_v33 }
  0x18   :  { %v78_v45 = vadd.f32 0.05243302, %v77_v41 }
  0x19   :  { %v50_v17 = vmul.f32 %v49_v14, %v32_v4  ;;  %v90_v25 = vmul.f32 %v89_v22, %v72_v9  ;;  %v39_v40 = vmul.f32 %v38_v37, %v32_v4 }
  0x1a   :  { %v79_v49 = vmul.f32 %v78_v45, %v72_v9 }
  0x1b   :  { %v51_v21 = vadd.f32 0.4994258, %v50_v17  ;;  %v91_v29 = vadd.f32 0.4994258, %v90_v25  ;;  %v40_v44 = vadd.f32 0.18741608, %v39_v40 }
  0x1c   :  { %v80_v55 = vadd.f32 0.18741608, %v79_v49  ;;  %v28_v17 = vmul.f32 0.5, %v234_v1 }
  0x1d   :  { %v52_v24 = vmul.f32 %v51_v21, %v32_v4  ;;  %v92_v32 = vmul.f32 %v91_v29, %v72_v9  ;;  %v41_v48 = vmul.f32 %v40_v44, %v32_v4 }
  0x1e   :  { %v81_v60 = vmul.f32 %v80_v55, %v72_v9 }
  0x1f   :  { %v53_v28 = vadd.f32 1.0, %v52_v24  ;;  %v93_v35 = vadd.f32 1.0, %v92_v32  ;;  %v42_v54 = vadd.f32 1.1283791, %v41_v48 }
  0x20   :  { %v82_v4 = vadd.f32 1.1283791, %v81_v60 }
  0x21   :  { %154 = vrcp.f32 %v53_v28  ;;  %vm59_vm0 = vweird.f32 %v53_v28  ;;  %v65_v50 = vand.u32 2147483648, %v53_v28  ;;  %v63_v52 = vand.u32 2147483647, %v53_v28 }
  0x22   :  { %156 = vrcp.f32 %v93_v35  ;;  %v43_v59 = vmul.f32 %v42_v54, %v238_v2  ;;  %vm99_vm4 = vweird.f32 %v93_v35  ;;  %v105_v62 = vand.u32 2147483648, %v93_v35 }
  0x23   :  { %v66_v56 = vor.u32 1.1754944e-38, %v65_v50  ;;  %vm64_vm3 = vcmp.eq.f32.partialorder %v63_v52, 8.507059e+37  ;;  %v103_v3 = vand.u32 2147483647, %v93_v35  ;;  %v83_v10 = vmul.f32 %v82_v4, %v243_v5 }
  0x24   :  { %v106_v7 = vor.u32 1.1754944e-38, %v105_v62 }
  0x25   :  { %vm104_vm7 = vcmp.eq.f32.partialorder %v103_v3, 8.507059e+37 }
  0x27   :  { %v155_v36 = vpop.eup %154 }
  0x28   :  { %v55_v39 = vmul.f32 %v155_v36, %v53_v28  ;;  %v157_v43 = vpop.eup %156  ;;  %vm60_vm1 = vweird.f32 %v155_v36 }
  0x29   :  { %v95_v47 = vmul.f32 %v157_v43, %v93_v35  ;;  %vm61_vm2 = vmor %vm59_vm0, %vm60_vm1  ;;  %vm100_vm5 = vweird.f32 %v157_v43 }
  0x2a   :  { %v56_v42 = vsub.f32 1.0, %v55_v39  ;;  %vm101_vm6 = vmor %vm99_vm4, %vm100_vm5 }
  0x2b   :  { %v96_v53 = vsub.f32 1.0, %v95_v47 }
  0x2c   :  { %v57_v46 = vmul.f32 %v155_v36, %v56_v42 }
  0x2d   :  { %v97_v58 = vmul.f32 %v157_v43, %v96_v53 }
  0x2e   :  { %v58_v51 = vadd.f32 %v155_v36, %v57_v46 }
  0x2f   :  { %v98_v63 = vadd.f32 %v157_v43, %v97_v58 }
  0x30   :  { %v62_v57 = vsel %vm61_vm2, %v155_v36, %v58_v51 }
  0x31   :  { %v67_v61 = vsel %vm64_vm3, %v66_v56, %v62_v57  ;;  %v102_v8 = vsel %vm101_vm6, %v157_v43, %v98_v63 }
  0x32   :  { %v68_v6 = vmul.f32 %v67_v61, %v43_v59  ;;  %v107_v12 = vsel %vm104_vm7, %v106_v7, %v102_v8 }
  0x33   :  { %v108_v9 = vmul.f32 %v107_v12, %v83_v10 }
  0x34   :  { %v147_v11 = vclamps-f32 %v68_v6, 1.0 }
  0x35   :  { %v148_v15 = vclamps-f32 %v108_v9, 1.0 }
  0x36   :  { %v111_v2 = vadd.f32 1.0, %v147_v11 }
  0x37   :  { %v112_v19 = vadd.f32 1.0, %v148_v15 }
  0x38   :  { %v113_v14 = vmul.f32 %v111_v2, %v27_v13 }
  0x39   :  { %v114_v20 = vmul.f32 %v112_v19, %v28_v17 }
  0x79   :  { %v118_v16 = vpop.permute.xlu0 %117 }
  0x7a   :  { %v123_v18 = vmul.f32 %v118_v16, %v113_v14 }
  0x7c   :  { %126 = vst.msk [vmem:[#allocation5] sm:$0xff] %vm125_vm8, %v123_v18 }
  0x81   :  { %v120_v5 = vpop.permute.xlu0 %119 }
  0x82   :  { %v124_v0 = vmul.f32 %v120_v5, %v114_v20 }
  0x84   :  { %127 = vst.msk [vmem:[#allocation5 + $0x8] sm:$0xff] %vm125_vm8, %v124_v0 }
  0x85   :  { %140 = dma.vmem_to_hbm [thread:$0]  %s133_s14, 256, %s135_s17, [#allocation4], %s211_s11, %s211_s11, %s212_s12  }
  0x86   :  { %208 = dma.done.wait [#allocation4], 256  }
  0x87   :  { %209 = vsyncadd [#allocation4], 4294967040 }
  0x88   :  { %145 = vsyncpa [#allocation3], 1 }
  0x89   :  { %146 = vsyncpa [#allocation4], 1 }

</bundles_post_ra>
